<compile_context>
chip_gen: v7x
topology: tpu7x:2x2x1
jax: 0.10.0
libtpu: 0.0.40
codegen_flags: <defaults>
</compile_context>

<pallas_src>
import functools

import jax
import jax.numpy as jnp
from jax import lax
from jax.experimental import pallas as pl
from jax.experimental.pallas import tpu as pltpu


def _round_up(x, m):
    return ((x + m - 1) // m) * m


def _lm_head_kernel(x_ref, w1_ref, b1_ref, gamma_ref, beta_ref,
                    w2_ref, b2_ref, out_ref, h_ref, *, eps):
    # x_ref: (tm, H)   w1_ref: (H, H)   b1/gamma/beta: (1, H)
    # w2_ref: (H, tn)  b2_ref: (1, tn)  out_ref: (tm, tn)  h_ref: (tm, H) f32

    # Transform (dense_ + ReLU + LayerNorm): compute once per row tile,
    # reuse across all decoder-column tiles.
    @pl.when(pl.program_id(1) == 0)
    def _():
        h = jnp.dot(x_ref[...], w1_ref[...],
                    preferred_element_type=jnp.float32)
        h = h + b1_ref[...].astype(jnp.float32)
        h = jnp.maximum(h, 0.0)
        mean = jnp.mean(h, axis=-1, keepdims=True)
        centered = h - mean
        var = jnp.mean(centered * centered, axis=-1, keepdims=True)
        h = centered * lax.rsqrt(var + eps)
        h = (h * gamma_ref[...].astype(jnp.float32)
             + beta_ref[...].astype(jnp.float32))
        h_ref[...] = h

    # decoder_ (with re-attached bias) for this column tile.
    out = jnp.dot(h_ref[...].astype(w2_ref.dtype), w2_ref[...],
                  preferred_element_type=jnp.float32)
    out_ref[...] = (out + b2_ref[...].astype(jnp.float32)).astype(out_ref.dtype)


def bert_lm_prediction_head(hidden_states, params, *, eps=1e-12,
                            row_tile=256, col_tile=1024):
    """hidden_states: (B, S, H) -> logits (B, S, num_labels).

    row_tile: MXU-aligned row block (256 good for v6e/v7x, 128 for v5e).
    col_tile: lane-dense decoder-output block (multiple of 128).
    # TODO(synk): per-generation tuning — on v7x cap col_tile so that the
    # double-buffered w2/out tiles + resident w1 + h scratch stay under 64 MiB.
    """
    B, S, H = hidden_states.shape
    w1, b1, gamma, beta, w2, b2 = (
        params["w1"], params["b1"], params["gamma"],
        params["beta"], params["w2"], params["b2"])
    L = w2.shape[1]

    x = hidden_states.reshape(B * S, H)
    N = x.shape[0]

    # --- Row tiling (pad instead of asserting divisibility). ---
    tm = min(row_tile, _round_up(N, 8))
    Np = _round_up(N, tm)
    if Np != N:
        x = jnp.pad(x, ((0, Np - N), (0, 0)))

    # --- Decoder-column tiling (keeps w2 blocks small and stores lane-dense). ---
    if L <= col_tile:
        tn, Lp = L, L
    else:
        tn = col_tile
        Lp = _round_up(L, tn)
    if Lp != L:
        w2 = jnp.pad(w2, ((0, 0), (0, Lp - L)))
        b2 = jnp.pad(b2, ((0, 0), (0, Lp - L)))

    grid = (Np // tm, Lp // tn)

    # --- VMEM budget: double-buffered x / w2+b2 / out tiles, resident
    #     transform params, f32 h scratch, plus headroom. ---
    act_bytes = jnp.dtype(hidden_states.dtype).itemsize
    w_bytes = jnp.dtype(w1.dtype).itemsize
    need = (2 * tm * H * act_bytes                 # x tiles
            + 2 * (H * tn + tn) * w_bytes          # w2 + b2 tiles
            + 2 * tm * tn * act_bytes              # out tiles
            + 2 * (H * H + 3 * H) * w_bytes        # w1, b1, gamma, beta
            + tm * H * 4)                          # h scratch (f32)
    vmem_limit = min(max(int(need * 2.5) + (4 << 20), 32 << 20), 100 << 20)

    out = pl.pallas_call(
        functools.partial(_lm_head_kernel, eps=eps),
        out_shape=jax.ShapeDtypeStruct((Np, Lp), hidden_states.dtype),
        grid_spec=pltpu.PrefetchScalarGridSpec(
            num_scalar_prefetch=0,
            grid=grid,
            in_specs=[
                pl.BlockSpec((tm, H), lambda i, j: (i, 0)),   # x rows
                pl.BlockSpec((H, H), lambda i, j: (0, 0)),    # dense weight
                pl.BlockSpec((1, H), lambda i, j: (0, 0)),    # dense bias
                pl.BlockSpec((1, H), lambda i, j: (0, 0)),    # LN gamma
                pl.BlockSpec((1, H), lambda i, j: (0, 0)),    # LN beta
                pl.BlockSpec((H, tn), lambda i, j: (0, j)),   # decoder weight tile
                pl.BlockSpec((1, tn), lambda i, j: (0, j)),   # decoder bias tile
            ],
            out_specs=pl.BlockSpec((tm, tn), lambda i, j: (i, j)),
            scratch_shapes=[pltpu.VMEM((tm, H), jnp.float32)],  # transform result
        ),
        compiler_params=pltpu.CompilerParams(
            dimension_semantics=("parallel", "arbitrary"),
            vmem_limit_bytes=vmem_limit),
    )(x, w1, b1, gamma, beta, w2, b2)

    return out[:N, :L].reshape(B, S, L)


def init_params(key, hidden_size, num_labels, dtype=jnp.float32):
    k1, k2 = jax.random.split(key, 2)
    scale = 0.02
    return {
        # stored as (in, out) == W_torch.T
        "w1": (scale * jax.random.normal(k1, (hidden_size, hidden_size))).astype(dtype),
        "b1": jnp.zeros((1, hidden_size), dtype),
        "gamma": jnp.ones((1, hidden_size), dtype),
        "beta": jnp.zeros((1, hidden_size), dtype),
        "w2": (scale * jax.random.normal(k2, (hidden_size, num_labels))).astype(dtype),
        "b2": jnp.zeros((1, num_labels), dtype),  # self.bias_ (zeros in __init__)
    }


def _reference(hidden_states, params, eps=1e-12):
    """Pure-JAX reference mirroring the PyTorch forward."""
    x = hidden_states.astype(jnp.float32)
    h = x @ params["w1"].astype(jnp.float32) + params["b1"].astype(jnp.float32)
    h = jnp.maximum(h, 0.0)
    mean = h.mean(-1, keepdims=True)
    var = ((h - mean) ** 2).mean(-1, keepdims=True)
    h = (h - mean) * lax.rsqrt(var + eps)
    h = h * params["gamma"].astype(jnp.float32) + params["beta"].astype(jnp.float32)
    out = h @ params["w2"].astype(jnp.float32) + params["b2"].astype(jnp.float32)
    return out.astype(hidden_states.dtype)


if __name__ == "__main__":
    root_key = jax.random.PRNGKey(0)

    def run_case(case_idx, B, S, H, L, row_tile, col_tile):
        key = jax.random.fold_in(root_key, case_idx)
        kx, kp = jax.random.split(key)
        hs = jax.random.normal(kx, (B, S, H), dtype=jnp.float32)
        params = init_params(kp, H, L)
        out = bert_lm_prediction_head(hs, params, eps=1e-12,
                                      row_tile=row_tile, col_tile=col_tile)
        out = jax.block_until_ready(out)
        ref = _reference(hs, params)
        assert out.shape == (B, S, L), out.shape
        assert jnp.allclose(out, ref, atol=1e-4, rtol=1e-4), \
            float(jnp.max(jnp.abs(out - ref)))

    # Small base case from the module spec (defaults, single tile).
    run_case(0, B=2, S=8, H=32, L=8, row_tile=256, col_tile=1024)
    # Ragged row count (exercises row padding) + tiled decoder columns
    # (exercises the L grid axis and the h-scratch reuse under pl.when).
    run_case(1, B=2, S=5, H=32, L=256, row_tile=8, col_tile=128)

    print("KERNEL_OK")
</pallas_src>

<mosaic_0001>
module attributes {stable_mosaic.version = 11 : i64} {
  func.func @_lm_head_kernel(%arg0: i32, %arg1: i32, %arg2: memref<16x32xf32, #tpu.memory_space<vmem>>, %arg3: memref<32x32xf32, #tpu.memory_space<vmem>>, %arg4: memref<1x32xf32, #tpu.memory_space<vmem>>, %arg5: memref<1x32xf32, #tpu.memory_space<vmem>>, %arg6: memref<1x32xf32, #tpu.memory_space<vmem>>, %arg7: memref<32x8xf32, #tpu.memory_space<vmem>>, %arg8: memref<1x8xf32, #tpu.memory_space<vmem>>, %arg9: memref<16x8xf32, #tpu.memory_space<vmem>>, %arg10: memref<16x32xf32, #tpu.memory_space<vmem>>) attributes {dimension_semantics = [#tpu.dimension_semantics<parallel>, #tpu.dimension_semantics<arbitrary>], iteration_bounds = array<i64: 1, 1>, scalar_prefetch = 0 : i64, scratch_operands = 1 : i64, tpu.core_type = #tpu.core_type<tc>, window_params = [{transform_indices = @transform_0, window_bounds = array<i64: 16, 32>}, {pipeline_mode = #tpu.pipeline_mode<synchronous>, transform_indices = @transform_1, window_bounds = array<i64: 32, 32>}, {pipeline_mode = #tpu.pipeline_mode<synchronous>, transform_indices = @transform_2, window_bounds = array<i64: 1, 32>}, {pipeline_mode = #tpu.pipeline_mode<synchronous>, transform_indices = @transform_3, window_bounds = array<i64: 1, 32>}, {pipeline_mode = #tpu.pipeline_mode<synchronous>, transform_indices = @transform_4, window_bounds = array<i64: 1, 32>}, {transform_indices = @transform_5, window_bounds = array<i64: 32, 8>}, {transform_indices = @transform_6, window_bounds = array<i64: 1, 8>}, {transform_indices = @transform_7, window_bounds = array<i64: 16, 8>}]} {
    %c0_i32 = arith.constant 0 : i32
    %0 = arith.cmpi eq, %arg1, %c0_i32 : i32
    %1 = arith.extui %0 : i1 to i32
    %c0_i32_0 = arith.constant 0 : i32
    %2 = arith.cmpi ne, %1, %c0_i32_0 : i32
    scf.if %2 {
      %c0_8 = arith.constant 0 : index
      %c0_9 = arith.constant 0 : index
      %10 = vector.load %arg2[%c0_8, %c0_9] : memref<16x32xf32, #tpu.memory_space<vmem>>, vector<16x32xf32>
      %c0_10 = arith.constant 0 : index
      %c0_11 = arith.constant 0 : index
      %11 = vector.load %arg3[%c0_10, %c0_11] : memref<32x32xf32, #tpu.memory_space<vmem>>, vector<32x32xf32>
      %cst_12 = arith.constant dense<0.000000e+00> : vector<16x32xf32>
      %12 = tpu.matmul %10, %11, %cst_12 {dimension_numbers = #tpu.dot_dimension_numbers<[1], [0], [0], [1], [0, 0, 1, 1], [], []>} : vector<16x32xf32>, vector<32x32xf32>, vector<16x32xf32> -> vector<16x32xf32>
      %c0_13 = arith.constant 0 : index
      %c0_14 = arith.constant 0 : index
      %13 = vector.load %arg4[%c0_13, %c0_14] : memref<1x32xf32, #tpu.memory_space<vmem>>, vector<1x32xf32>
      %14 = vector.broadcast %13 : vector<1x32xf32> to vector<16x32xf32>
      %15 = arith.addf %12, %14 : vector<16x32xf32>
      %cst_15 = arith.constant 0.000000e+00 : f32
      %16 = vector.broadcast %cst_15 : f32 to vector<16x32xf32>
      %17 = arith.maximumf %15, %16 : vector<16x32xf32>
      %cst_16 = arith.constant dense<0.000000e+00> : vector<16xf32>
      %18 = vector.multi_reduction <add>, %17, %cst_16 [1] : vector<16x32xf32> to vector<16xf32>
      %19 = vector.shape_cast %18 : vector<16xf32> to vector<16x1xf32>
      %cst_17 = arith.constant 3.200000e+01 : f32
      %20 = vector.broadcast %cst_17 : f32 to vector<16x1xf32>
      %21 = arith.divf %19, %20 : vector<16x1xf32>
      %22 = vector.broadcast %21 : vector<16x1xf32> to vector<16x32xf32>
      %23 = arith.subf %17, %22 : vector<16x32xf32>
      %24 = arith.mulf %23, %23 : vector<16x32xf32>
      %cst_18 = arith.constant dense<0.000000e+00> : vector<16xf32>
      %25 = vector.multi_reduction <add>, %24, %cst_18 [1] : vector<16x32xf32> to vector<16xf32>
      %26 = vector.shape_cast %25 : vector<16xf32> to vector<16x1xf32>
      %cst_19 = arith.constant 3.200000e+01 : f32
      %27 = vector.broadcast %cst_19 : f32 to vector<16x1xf32>
      %28 = arith.divf %26, %27 : vector<16x1xf32>
      %cst_20 = arith.constant 9.99999996E-13 : f32
      %29 = vector.broadcast %cst_20 : f32 to vector<16x1xf32>
      %30 = arith.addf %28, %29 : vector<16x1xf32>
      %31 = math.rsqrt %30 : vector<16x1xf32>
      %32 = vector.broadcast %31 : vector<16x1xf32> to vector<16x32xf32>
      %33 = arith.mulf %23, %32 : vector<16x32xf32>
      %c0_21 = arith.constant 0 : index
      %c0_22 = arith.constant 0 : index
      %34 = vector.load %arg5[%c0_21, %c0_22] : memref<1x32xf32, #tpu.memory_space<vmem>>, vector<1x32xf32>
      %35 = vector.broadcast %34 : vector<1x32xf32> to vector<16x32xf32>
      %36 = arith.mulf %33, %35 : vector<16x32xf32>
      %c0_23 = arith.constant 0 : index
      %c0_24 = arith.constant 0 : index
      %37 = vector.load %arg6[%c0_23, %c0_24] : memref<1x32xf32, #tpu.memory_space<vmem>>, vector<1x32xf32>
      %38 = vector.broadcast %37 : vector<1x32xf32> to vector<16x32xf32>
      %39 = arith.addf %36, %38 : vector<16x32xf32>
      %c0_25 = arith.constant 0 : index
      %c0_26 = arith.constant 0 : index
      %40 = vector.load %arg10[%c0_25, %c0_26] : memref<16x32xf32, #tpu.memory_space<vmem>>, vector<16x32xf32>
      tpu.vector_store %arg10[%c0_25, %c0_26], %39 {strides = array<i32>} : memref<16x32xf32, #tpu.memory_space<vmem>>, vector<16x32xf32>,
    } else {
    }
    %c0 = arith.constant 0 : index
    %c0_1 = arith.constant 0 : index
    %3 = vector.load %arg10[%c0, %c0_1] : memref<16x32xf32, #tpu.memory_space<vmem>>, vector<16x32xf32>
    %c0_2 = arith.constant 0 : index
    %c0_3 = arith.constant 0 : index
    %4 = vector.load %arg7[%c0_2, %c0_3] : memref<32x8xf32, #tpu.memory_space<vmem>>, vector<32x8xf32>
    %cst = arith.constant dense<0.000000e+00> : vector<16x8xf32>
    %5 = tpu.matmul %3, %4, %cst {dimension_numbers = #tpu.dot_dimension_numbers<[1], [0], [0], [1], [0, 0, 1, 1], [], []>} : vector<16x32xf32>, vector<32x8xf32>, vector<16x8xf32> -> vector<16x8xf32>
    %c0_4 = arith.constant 0 : index
    %c0_5 = arith.constant 0 : index
    %6 = vector.load %arg8[%c0_4, %c0_5] : memref<1x8xf32, #tpu.memory_space<vmem>>, vector<1x8xf32>
    %7 = vector.broadcast %6 : vector<1x8xf32> to vector<16x8xf32>
    %8 = arith.addf %5, %7 : vector<16x8xf32>
    %c0_6 = arith.constant 0 : index
    %c0_7 = arith.constant 0 : index
    %9 = vector.load %arg9[%c0_6, %c0_7] : memref<16x8xf32, #tpu.memory_space<vmem>>, vector<16x8xf32>
    tpu.vector_store %arg9[%c0_6, %c0_7], %8 {strides = array<i32>} : memref<16x8xf32, #tpu.memory_space<vmem>>, vector<16x8xf32>,
    return
  }
  func.func @transform_0(%arg0: i32, %arg1: i32) -> (i32, i32) {
    %c0_i32 = arith.constant 0 : i32
    %c0_i32_0 = arith.constant 0 : i32
    return %arg0, %c0_i32 : i32, i32
  }
  func.func @transform_1(%arg0: i32, %arg1: i32) -> (i32, i32) {
    %c0_i32 = arith.constant 0 : i32
    %c0_i32_0 = arith.constant 0 : i32
    %c0_i32_1 = arith.constant 0 : i32
    return %c0_i32, %c0_i32_0 : i32, i32
  }
  func.func @transform_2(%arg0: i32, %arg1: i32) -> (i32, i32) {
    %c0_i32 = arith.constant 0 : i32
    %c0_i32_0 = arith.constant 0 : i32
    %c0_i32_1 = arith.constant 0 : i32
    return %c0_i32, %c0_i32_0 : i32, i32
  }
  func.func @transform_3(%arg0: i32, %arg1: i32) -> (i32, i32) {
    %c0_i32 = arith.constant 0 : i32
    %c0_i32_0 = arith.constant 0 : i32
    %c0_i32_1 = arith.constant 0 : i32
    return %c0_i32, %c0_i32_0 : i32, i32
  }
  func.func @transform_4(%arg0: i32, %arg1: i32) -> (i32, i32) {
    %c0_i32 = arith.constant 0 : i32
    %c0_i32_0 = arith.constant 0 : i32
    %c0_i32_1 = arith.constant 0 : i32
    return %c0_i32, %c0_i32_0 : i32, i32
  }
  func.func @transform_5(%arg0: i32, %arg1: i32) -> (i32, i32) {
    %c0_i32 = arith.constant 0 : i32
    %c0_i32_0 = arith.constant 0 : i32
    return %c0_i32, %arg1 : i32, i32
  }
  func.func @transform_6(%arg0: i32, %arg1: i32) -> (i32, i32) {
    %c0_i32 = arith.constant 0 : i32
    %c0_i32_0 = arith.constant 0 : i32
    return %c0_i32, %arg1 : i32, i32
  }
  func.func @transform_7(%arg0: i32, %arg1: i32) -> (i32, i32) {
    %c0_i32 = arith.constant 0 : i32
    return %arg0, %arg1 : i32, i32
  }
}

</mosaic_0001>

<bundles_post_ra>
// kernel: tpu_custom_call.1
= control target key start
LH: loop header
LB: loop body
LE: loop exit
PB: predicated region body
PF: predicated region fallthrough
CT: control target
= control target key end

     0   :  { %12 = vsyncpa [#allocation4], 0  ;;  %s380_s24 = smov [#allocation3]   ;;  %s487_s0 = inlined_call_operand.hbm [shape: f32[16,32], index: 0, kind: input, shape index: {}]   ;;  %s488_s1 = inlined_call_operand.vmem [shape: f32[32,32], index: 1, kind: input, shape index: {}]   ;;  %s489_s2 = inlined_call_operand.vmem [shape: f32[1,32], index: 2, kind: input, shape index: {}]   ;;  %s490_s3 = inlined_call_operand.vmem [shape: f32[1,32], index: 3, kind: input, shape index: {}]   ;;  %s491_s4 = inlined_call_operand.vmem [shape: f32[1,32], index: 4, kind: input, shape index: {}]   ;;  %s492_s5 = inlined_call_operand.vmem [shape: f32[32,8], index: 5, kind: input, shape index: {}]   ;;  %s493_s6 = inlined_call_operand.vmem [shape: f32[1,8], index: 6, kind: input, shape index: {}]   ;;  %s494_s7 = inlined_call_operand.vmem [shape: f32[16,8], index: 7, kind: output, shape index: {}]  }
   0x1   :  { %s18_s25 = sshll.u32 %s380_s24, 4  ;;  %s356_s28 = scalar_lea.hbm %s487_s0, 256  ;;  %s19_s25 = int_to_ptr.vmem [resolvable:$true] %s18_s25 }
   0x2   :  { %p357_p0 = scmp.ne.s32.totalorder %s487_s0, %s356_s28  ;;  %p360_p1 = scmp.lt.u32.totalorder %s356_s28, %s487_s0 }
   0x4   :  { %p362_p2 = pnand %p360_p1, %p357_p0 }
   0x6   :  { %365 = shalt.err (!%p362_p2)
}
   0x7   :  { %s366_s10 = scalar_lea.vmem %s19_s25, 256  ;;  %p371_p4 = scmp.lt.s32.totalorder %s19_s25, %s19_s25 }
   0x8   :  { %p367_p3 = scmp.ne.s32.totalorder %s19_s25, %s366_s10  ;;  %p372_p5 = scmp.lt.s32.totalorder %s366_s10, %s366_s10 }
   0xa   :  { %p373_p6 = por %p372_p5, %p371_p4 }
   0xc   :  { %p374_p7 = pnand %p373_p6, %p367_p3 }
   0xe   :  { %377 = shalt.err (!%p374_p7)
}
   0xf   :  { %s381_s11 = smov 128   ;;  %s382_s12 = smov 8  }
  0x10   :  { %24 = dma.hbm_to_vmem [thread:$0]  %s487_s0, 256, %s19_s25, [#allocation4], %s381_s11, %s381_s11, %s382_s12  }
  0x11   :  { %378 = dma.done.wait [#allocation4], 256  }
  0x12   :  { %379 = vsyncadd [#allocation4], 4294967040  ;;  %vm57_vm0 = vcmask 261120   ;;  %v46_v0 = vld [vmem:[%s488_s1] sm:$0xff]  ;;  %v47_v1 = vld [vmem:[%s488_s1 + $0x8] sm:$0xff]  ;;  %vm283_vm1 = vcmask 64512  }
  0x13   :  { %v48_v2 = vld [vmem:[%s488_s1 + $0x10] sm:$0xff]  ;;  %v333_v3 = vpack.c.bf16 %v47_v1, %v46_v0  ;;  %v49_v4 = vld [vmem:[%s488_s1 + $0x18] sm:$0xff]  ;;  %v291_v8 = vld [vmem:[%s489_s2] ss:$0 sm:$0xff] }
  0x14   :  { %v44_v5 = vld [vmem:[#allocation3] sm:$0xff]  ;;  %v337_v6 = vpack.c.bf16 %v49_v4, %v48_v2  ;;  %v45_v7 = vld [vmem:[#allocation3 + $0x8] sm:$0xff]  ;;  %v190_v27 = vld [vmem:[%s492_s5] sm:$0xff] }
  0x15   :  { %319 = vmatprep.mubr.msk.f32.mxu0 %vm57_vm0, %v44_v5  ;;  %334 = vmatprep.subr.bf16.mxu0 %v333_v3  ;;  %v191_v28 = vld [vmem:[%s492_s5 + $0x8] sm:$0xff]  ;;  %v192_v30 = vld [vmem:[%s492_s5 + $0x10] sm:$0xff]  ;;  %v193_v31 = vld [vmem:[%s492_s5 + $0x18] sm:$0xff] }
  0x16   :  { %336 = vmatpush3.bf16.msra.mxu0 %v333_v3  ;;  %v341_v29 = vpack.c.bf16 %v191_v28, %v190_v27  ;;  %v345_v32 = vpack.c.bf16 %v193_v31, %v192_v30  ;;  %v294_v40 = vld [vmem:[%s490_s3] ss:$0 sm:$0xff] }
  0x17   :  { %338 = vmatprep.subr.bf16.mxu0 %v337_v6  ;;  %v295_v42 = vld [vmem:[%s491_s4] ss:$0 sm:$0xff] }
  0x18   :  { %342 = vmatprep.subr.bf16.mxu1 %v341_v29  ;;  %v296_v51 = vld [vmem:[%s493_s6] ss:$0 sm:$0xff] }
  0x19   :  { %344 = vmatpush3.bf16.msra.mxu1 %v341_v29 }
  0x1a   :  { %340 = vmatpush3.bf16.msra.mxu0 %v337_v6  ;;  %346 = vmatprep.subr.bf16.mxu1 %v345_v32 }
  0x1d   :  { %320 = vmatmul.mubr.msk.f32.vlgmr.msra.gmra.mrb[0].mxu0 %vm57_vm0, %v45_v7  ;;  %348 = vmatpush3.bf16.msra.mxu1 %v345_v32 }
  0xf0   :  { %v321_v9 = vpop.f32.mrb[0].mxu0 }
  0xf1   :  { %v130_v10 = vpop.f32.mrb[1].mxu0  ;;  %v136_v11 = vadd.f32 %v321_v9, %v291_v8 }
  0xf2   :  { %v131_v12 = vadd.f32 %v291_v8, %v130_v10 }
  0xf3   :  { %v140_v14 = vmax.f32 %v136_v11, 0.0 }
  0xf4   :  { %v139_v13 = vmax.f32 %v131_v12, 0.0 }
  0xf5   :  { %v144_v16 = vsel %vm57_vm0, %v140_v14, 0.0 }
  0xf6   :  { %v141_v15 = vsel %vm57_vm0, %v139_v13, 0.0 }
  0xf7   :  { %142 = vadd.xlane.f32.xlu0 %v141_v15 }
  0xfb   :  { %145 = vadd.xlane.f32.xlu0 %v144_v16 }
 0x184   :  { %v143_v17 = vpop.xlane.xlu0 %142 }
 0x185   :  { %v148_v18 = vmul.f32 0.03125, %v143_v17 }
 0x187   :  { %v150_v19 = vsub.f32 %v139_v13, %v148_v18 }
 0x188   :  { %v146_v20 = vpop.xlane.xlu0 %145 }
 0x189   :  { %v149_v21 = vmul.f32 0.03125, %v146_v20  ;;  %v152_v22 = vmul.f32 %v150_v19, %v150_v19 }
 0x18b   :  { %v151_v23 = vsub.f32 %v140_v14, %v149_v21  ;;  %v154_v24 = vsel %vm57_vm0, %v152_v22, 0.0 }
 0x18c   :  { %155 = vadd.xlane.f32.xlu1 %v154_v24 }
 0x18d   :  { %v153_v25 = vmul.f32 %v151_v23, %v151_v23 }
 0x18f   :  { %v157_v26 = vsel %vm57_vm0, %v153_v25, 0.0 }
 0x190   :  { %158 = vadd.xlane.f32.xlu1 %v157_v26 }
 0x219   :  { %v156_v33 = vpop.xlane.xlu1 %155 }
 0x21a   :  { %v160_v34 = vmul.f32 0.03125, %v156_v33 }
 0x21c   :  { %v162_v35 = vadd.f32 1e-12, %v160_v34 }
 0x21d   :  { %v159_v36 = vpop.xlane.xlu1 %158 }
 0x21e   :  { %352 = vrsqrt.f32 %v162_v35  ;;  %v161_v37 = vmul.f32 0.03125, %v159_v36 }
 0x220   :  { %v163_v38 = vadd.f32 1e-12, %v161_v37 }
 0x222   :  { %354 = vrsqrt.f32 %v163_v38 }
 0x228   :  { %v353_v39 = vpop.eup %352 }
 0x229   :  { %v166_v41 = vmul.f32 %v353_v39, %v150_v19 }
 0x22b   :  { %v175_v43 = vmul.f32 %v294_v40, %v166_v41 }
 0x22c   :  { %v355_v44 = vpop.eup %354 }
 0x22d   :  { %v184_v45 = vadd.f32 %v295_v42, %v175_v43  ;;  %v167_v46 = vmul.f32 %v355_v44, %v151_v23 }
 0x22f   :  { %186 = vst.msk [vmem:[#allocation2] sm:$0xff] %vm57_vm0, %v184_v45  ;;  %v176_v47 = vmul.f32 %v294_v40, %v167_v46 }
 0x231   :  { %v185_v48 = vadd.f32 %v295_v42, %v176_v47 }
 0x233   :  { %187 = vst.msk [vmem:[#allocation2 + $0x8] sm:$0xff] %vm57_vm0, %v185_v48 }
 0x236   :  { %v188_v49 = vld [vmem:[#allocation2] sm:$0xff] }
 0x237   :  { %330 = vmatprep.mubr.msk.f32.mxu1 %vm57_vm0, %v188_v49 }
 0x23a   :  { %v189_v50 = vld [vmem:[#allocation2 + $0x8] sm:$0xff] }
 0x23b   :  { %331 = vmatmul.mubr.msk.f32.vlgmr.msra.gmra.mrb[0].mxu1 %vm57_vm0, %v189_v50 }
 0x30e   :  { %v332_v52 = vpop.f32.mrb[0].mxu1 }
 0x30f   :  { %v280_v53 = vadd.f32 %v332_v52, %v296_v51  ;;  %v274_v54 = vpop.f32.mrb[1].mxu1 }
 0x310   :  { %v275_v55 = vadd.f32 %v296_v51, %v274_v54 }
 0x311   :  { %285 = vst.msk [vmem:[%s494_s7 + $0x8] sm:$0xff] %vm283_vm1, %v280_v53 }
 0x312   :  { %284 = vst.msk [vmem:[%s494_s7] sm:$0xff] %vm283_vm1, %v275_v55 }
 0x313   :  { %290 = vsyncpa [#allocation4], 1 }

</bundles_post_ra>
